<compile_context>
chip_gen: v6e
topology: v6e:2x2x1
jax: 0.10.0
libtpu: 0.0.40
codegen_flags: <defaults>
</compile_context>

<pallas_src>
import functools

import jax
import jax.numpy as jnp
from jax.experimental import pallas as pl
from jax.experimental.pallas import tpu as pltpu


def _round_up(x, m):
    return (x + m - 1) // m * m


def _resnet_decoder_kernel(x_ref, w_ref, b_ref, o_ref):
    # x_ref: (TN, HW, C)   w_ref: (C, NCLS_PAD)  [pre-scaled by 1/HW]
    # b_ref: (1, NCLS_PAD) o_ref: (TN, NCLS_PAD)
    x = x_ref[...].astype(jnp.float32)
    # Global average pool: sum over the flattened spatial axis; the 1/HW scale
    # is folded into the weight by the wrapper.
    pooled = jnp.sum(x, axis=1)                                      # (TN, C)
    out = jnp.dot(pooled, w_ref[...].astype(jnp.float32),
                  preferred_element_type=jnp.float32)                # (TN, NCLS_PAD)
    out = out + b_ref[...].astype(jnp.float32)
    o_ref[...] = out.astype(o_ref.dtype)


def _choose_batch_tile(n, hw, c, itemsize, *, pair_budget_bytes=32 << 20,
                       max_tile=512):
    """Largest multiple-of-8 batch tile whose double-buffered x pair fits budget."""
    per_row = hw * c * itemsize
    tn = (pair_budget_bytes // (2 * max(per_row, 1))) // 8 * 8
    tn = max(8, min(int(tn), max_tile))
    tn = min(tn, _round_up(n, 8))
    return tn


def resnet_decoder(x, weight, bias, *, input_dtype=None):
    """x: (N, C, H, W); weight: (n_classes, C) [PyTorch layout]; bias: (n_classes,)."""
    n, c, h, w = x.shape
    n_classes = weight.shape[0]
    hw = h * w

    # ----- wrapper-side layout plumbing (plain XLA ops) -----
    # Channels-last: (N, HW, C) so C sits on the lane dimension.
    x_cl = jnp.transpose(x.reshape(n, c, hw), (0, 2, 1))
    if input_dtype is not None:  # optional bf16 streaming (v6e/v7x); f32 accumulate in-kernel
        x_cl = x_cl.astype(input_dtype)

    # Pad n_classes to a lane-dense multiple of 128; fold 1/HW into the weight.
    ncls_pad = max(128, _round_up(n_classes, 128))
    w_scaled = (weight.T.astype(jnp.float32) / float(hw))            # (C, n_classes)
    w_t = jnp.zeros((c, ncls_pad), jnp.float32).at[:, :n_classes].set(w_scaled)
    b2 = jnp.zeros((1, ncls_pad), jnp.float32).at[:, :n_classes].set(
        bias.astype(jnp.float32))

    # Batch tiling (pipelined streaming of x).
    tn = _choose_batch_tile(n, hw, c, jnp.dtype(x_cl.dtype).itemsize)
    n_pad = _round_up(n, tn)
    if n_pad != n:
        x_cl = jnp.pad(x_cl, ((0, n_pad - n), (0, 0), (0, 0)))
    grid = (n_pad // tn,)

    # Explicit VMEM budget: 2x double-buffered x tile (+ f32 temp headroom),
    # resident weight/bias, double-buffered output tile.  Stays under v7x's 64 MiB.
    x_tile_bytes = tn * hw * c * jnp.dtype(x_cl.dtype).itemsize
    w_bytes = c * ncls_pad * 4
    out_tile_bytes = tn * ncls_pad * 4
    vmem_limit = int(min(56 << 20,
                         max(16 << 20,
                             4 * x_tile_bytes + 2 * w_bytes + 4 * out_tile_bytes
                             + (4 << 20))))

    out_padded = pl.pallas_call(
        _resnet_decoder_kernel,
        out_shape=jax.ShapeDtypeStruct((n_pad, ncls_pad), x.dtype),
        grid_spec=pltpu.PrefetchScalarGridSpec(
            num_scalar_prefetch=0,
            grid=grid,
            in_specs=[
                # x streams in batch tiles; HW and C are full-extent (lane-dense C).
                pl.BlockSpec((tn, hw, c), lambda i: (i, 0, 0)),
                # Weight & bias: constant block index -> DMA'd once, stay resident.
                pl.BlockSpec((c, ncls_pad), lambda i: (0, 0)),
                pl.BlockSpec((1, ncls_pad), lambda i: (0, 0)),
            ],
            out_specs=pl.BlockSpec((tn, ncls_pad), lambda i: (i, 0)),
        ),
        compiler_params=pltpu.CompilerParams(
            dimension_semantics=("parallel",),     # megacore sharding on v7x
            vmem_limit_bytes=vmem_limit,
        ),
    )(x_cl, w_t, b2)

    # Slice away the batch / class padding.
    return out_padded[:n, :n_classes]


def resnet_decoder_ref(x, weight, bias):
    pooled = jnp.mean(x.astype(jnp.float32), axis=(2, 3))            # (N, C)
    return pooled @ weight.T.astype(jnp.float32) + bias.astype(jnp.float32)


if __name__ == "__main__":
    # Small shapes consistent with the module: batch=2, in_features=4,
    # spatial=16x16, n_classes=8.
    N, C, H, W, NCLS = 2, 4, 16, 16, 8

    key = jax.random.PRNGKey(0)
    kx, kw, kb = jax.random.split(key, 3)
    x = jax.random.normal(kx, (N, C, H, W), dtype=jnp.float32)
    # PyTorch Linear weight layout: (n_classes, in_features)
    weight = jax.random.normal(kw, (NCLS, C), dtype=jnp.float32) * 0.1
    bias = jax.random.normal(kb, (NCLS,), dtype=jnp.float32) * 0.1

    out = resnet_decoder(x, weight, bias)
    out = jax.block_until_ready(out)

    ref = resnet_decoder_ref(x, weight, bias)
    assert out.shape == (N, NCLS), out.shape
    assert jnp.allclose(out, ref, atol=1e-5, rtol=1e-5), (out, ref)

    print("KERNEL_OK")
</pallas_src>

<mosaic_0001>
module attributes {stable_mosaic.version = 11 : i64} {
  func.func @_resnet_decoder_kernel(%arg0: i32, %arg1: memref<8x256x4xf32, #tpu.memory_space<vmem>>, %arg2: memref<4x128xf32, #tpu.memory_space<vmem>>, %arg3: memref<1x128xf32, #tpu.memory_space<vmem>>, %arg4: memref<8x128xf32, #tpu.memory_space<vmem>>) attributes {dimension_semantics = [#tpu.dimension_semantics<parallel>], iteration_bounds = array<i64: 1>, scalar_prefetch = 0 : i64, scratch_operands = 0 : i64, tpu.core_type = #tpu.core_type<tc>, window_params = [{transform_indices = @transform_0, window_bounds = array<i64: 8, 256, 4>}, {pipeline_mode = #tpu.pipeline_mode<synchronous>, transform_indices = @transform_1, window_bounds = array<i64: 4, 128>}, {pipeline_mode = #tpu.pipeline_mode<synchronous>, transform_indices = @transform_2, window_bounds = array<i64: 1, 128>}, {transform_indices = @transform_3, window_bounds = array<i64: 8, 128>}]} {
    %c0 = arith.constant 0 : index
    %c0_0 = arith.constant 0 : index
    %c0_1 = arith.constant 0 : index
    %0 = vector.load %arg1[%c0, %c0_0, %c0_1] : memref<8x256x4xf32, #tpu.memory_space<vmem>>, vector<8x256x4xf32>
    %cst = arith.constant dense<0.000000e+00> : vector<8x4xf32>
    %1 = vector.multi_reduction <add>, %0, %cst [1] : vector<8x256x4xf32> to vector<8x4xf32>
    %c0_2 = arith.constant 0 : index
    %c0_3 = arith.constant 0 : index
    %2 = vector.load %arg2[%c0_2, %c0_3] : memref<4x128xf32, #tpu.memory_space<vmem>>, vector<4x128xf32>
    %cst_4 = arith.constant dense<0.000000e+00> : vector<8x128xf32>
    %3 = tpu.matmul %1, %2, %cst_4 {dimension_numbers = #tpu.dot_dimension_numbers<[1], [0], [0], [1], [0, 0, 1, 1], [], []>} : vector<8x4xf32>, vector<4x128xf32>, vector<8x128xf32> -> vector<8x128xf32>
    %c0_5 = arith.constant 0 : index
    %c0_6 = arith.constant 0 : index
    %4 = vector.load %arg3[%c0_5, %c0_6] : memref<1x128xf32, #tpu.memory_space<vmem>>, vector<1x128xf32>
    %5 = vector.broadcast %4 : vector<1x128xf32> to vector<8x128xf32>
    %6 = arith.addf %3, %5 : vector<8x128xf32>
    %c0_7 = arith.constant 0 : index
    %c0_8 = arith.constant 0 : index
    %7 = vector.load %arg4[%c0_7, %c0_8] : memref<8x128xf32, #tpu.memory_space<vmem>>, vector<8x128xf32>
    tpu.vector_store %arg4[%c0_7, %c0_8], %6 {strides = array<i32>} : memref<8x128xf32, #tpu.memory_space<vmem>>, vector<8x128xf32>,
    return
  }
  func.func @transform_0(%arg0: i32) -> (i32, i32, i32) {
    %c0_i32 = arith.constant 0 : i32
    %c0_i32_0 = arith.constant 0 : i32
    %c0_i32_1 = arith.constant 0 : i32
    return %arg0, %c0_i32, %c0_i32_0 : i32, i32, i32
  }
  func.func @transform_1(%arg0: i32) -> (i32, i32) {
    %c0_i32 = arith.constant 0 : i32
    %c0_i32_0 = arith.constant 0 : i32
    %c0_i32_1 = arith.constant 0 : i32
    return %c0_i32, %c0_i32_0 : i32, i32
  }
  func.func @transform_2(%arg0: i32) -> (i32, i32) {
    %c0_i32 = arith.constant 0 : i32
    %c0_i32_0 = arith.constant 0 : i32
    %c0_i32_1 = arith.constant 0 : i32
    return %c0_i32, %c0_i32_0 : i32, i32
  }
  func.func @transform_3(%arg0: i32) -> (i32, i32) {
    %c0_i32 = arith.constant 0 : i32
    %c0_i32_0 = arith.constant 0 : i32
    return %arg0, %c0_i32 : i32, i32
  }
}

</mosaic_0001>

<bundles_post_ra>
// kernel: tpu_custom_call.1
= control target key start
LH: loop header
LB: loop body
LE: loop exit
PB: predicated region body
PF: predicated region fallthrough
CT: control target
= control target key end

     0   :  { %8 = vsyncpa [#allocation3], 0  ;;  %vm271_vm0 = vcmask 31744   ;;  %vm856_vm1 = vcmask 1043456   ;;  %vm981_vm2 = vmmov 0   ;;  %vm840_vm3 = vcmask 1041409   ;;  %s2206_s0 = inlined_call_operand.vmem [shape: f32[8,256,4], index: 0, kind: input, shape index: {}]   ;;  %s2207_s1 = inlined_call_operand.vmem [shape: f32[4,128], index: 1, kind: input, shape index: {}]   ;;  %s2208_s2 = inlined_call_operand.vmem [shape: f32[1,128], index: 2, kind: input, shape index: {}]   ;;  %s2209_s3 = inlined_call_operand.hbm [shape: f32[8,128], index: 3, kind: output, shape index: {}]  }
   0x1   :  { %v15_v0 = vld [vmem:[%s2206_s0] sm:$0xff]  ;;  %v16_v1 = vld [vmem:[%s2206_s0 + $0x8] sm:$0xff]  ;;  %v17_v2 = vld [vmem:[%s2206_s0 + $0x10] sm:$0xff]  ;;  %vm842_vm4 = vcmask 1042434   ;;  %vm844_vm5 = vcmask 1043459   ;;  %vm846_vm6 = vcmask 1044484  }
   0x2   :  { %v272_v3 = vsel %vm271_vm0, %v15_v0, 0.0  ;;  %v273_v4 = vsel %vm271_vm0, %v16_v1, 0.0  ;;  %v18_v5 = vld [vmem:[%s2206_s0 + $0x18] sm:$0xff]  ;;  %v275_v7 = vsel %vm271_vm0, %v17_v2, 0.0  ;;  %v19_v10 = vld [vmem:[%s2206_s0 + $0x20] sm:$0xff]  ;;  %v20_v13 = vld [vmem:[%s2206_s0 + $0x28] sm:$0xff] }
   0x3   :  { %v274_v6 = vadd.f32 %v273_v4, %v272_v3  ;;  %v277_v9 = vsel %vm271_vm0, %v18_v5, 0.0  ;;  %v279_v12 = vsel %vm271_vm0, %v19_v10, 0.0  ;;  %v47_v14 = vld [vmem:[%s2206_s0 + $0x100] sm:$0xff]  ;;  %v48_v15 = vld [vmem:[%s2206_s0 + $0x108] sm:$0xff]  ;;  %v49_v16 = vld [vmem:[%s2206_s0 + $0x110] sm:$0xff]  ;;  %v281_v23 = vsel %vm271_vm0, %v20_v13, 0.0 }
   0x4   :  { %v50_v17 = vld [vmem:[%s2206_s0 + $0x118] sm:$0xff]  ;;  %v341_v19 = vsel %vm271_vm0, %v47_v14, 0.0  ;;  %v342_v20 = vsel %vm271_vm0, %v48_v15, 0.0  ;;  %v344_v21 = vsel %vm271_vm0, %v49_v16, 0.0  ;;  %v51_v22 = vld [vmem:[%s2206_s0 + $0x120] sm:$0xff]  ;;  %v21_v25 = vld [vmem:[%s2206_s0 + $0x30] sm:$0xff] }
   0x5   :  { %v276_v8 = vadd.f32 %v275_v7, %v274_v6  ;;  %v343_v24 = vadd.f32 %v342_v20, %v341_v19  ;;  %v346_v26 = vsel %vm271_vm0, %v50_v17, 0.0  ;;  %v52_v28 = vld [vmem:[%s2206_s0 + $0x128] sm:$0xff]  ;;  %v348_v30 = vsel %vm271_vm0, %v51_v22, 0.0  ;;  %v22_v33 = vld [vmem:[%s2206_s0 + $0x38] sm:$0xff]  ;;  %v53_v36 = vld [vmem:[%s2206_s0 + $0x130] sm:$0xff]  ;;  %s982_s11 = smov [#allocation2]  }
   0x6   :  { %v283_v31 = vsel %vm271_vm0, %v21_v25, 0.0  ;;  %v350_v35 = vsel %vm271_vm0, %v52_v28, 0.0  ;;  %v23_v38 = vld [vmem:[%s2206_s0 + $0x40] sm:$0xff]  ;;  %v285_v40 = vsel %vm271_vm0, %v22_v33, 0.0  ;;  %v80_v41 = vld [vmem:[%s2206_s0 + $0x208] sm:$0xff]  ;;  %v81_v42 = vld [vmem:[%s2206_s0 + $0x210] sm:$0xff] }
   0x7   :  { %v278_v11 = vadd.f32 %v277_v9, %v276_v8  ;;  %v345_v27 = vadd.f32 %v344_v21, %v343_v24  ;;  %v79_v39 = vld [vmem:[%s2206_s0 + $0x200] sm:$0xff]  ;;  %v82_v43 = vld [vmem:[%s2206_s0 + $0x218] sm:$0xff]  ;;  %v352_v46 = vsel %vm271_vm0, %v53_v36, 0.0  ;;  %v411_v47 = vsel %vm271_vm0, %v80_v41, 0.0  ;;  %v24_v55 = vld [vmem:[%s2206_s0 + $0x48] sm:$0xff]  ;;  %s937_s12 = sshll.u32 %s982_s11, 4  ;;  %s938_s12 = int_to_ptr.vmem [resolvable:$true] %s937_s12 }
   0x8   :  { %v410_v45 = vsel %vm271_vm0, %v79_v39, 0.0  ;;  %v413_v48 = vsel %vm271_vm0, %v81_v42, 0.0  ;;  %v54_v49 = vld [vmem:[%s2206_s0 + $0x138] sm:$0xff]  ;;  %v83_v50 = vld [vmem:[%s2206_s0 + $0x220] sm:$0xff]  ;;  %v287_v53 = vsel %vm271_vm0, %v23_v38, 0.0  ;;  %v415_v54 = vsel %vm271_vm0, %v82_v43, 0.0  ;;  %p963_p1 = scmp.lt.s32.totalorder %s938_s12, %s938_s12 }
   0x9   :  { %v280_v18 = vadd.f32 %v279_v12, %v278_v11  ;;  %v347_v32 = vadd.f32 %v346_v26, %v345_v27  ;;  %v412_v52 = vadd.f32 %v411_v47, %v410_v45  ;;  %v84_v56 = vld [vmem:[%s2206_s0 + $0x228] sm:$0xff]  ;;  %v354_v59 = vsel %vm271_vm0, %v54_v49, 0.0  ;;  %v55_v61 = vld [vmem:[%s2206_s0 + $0x140] sm:$0xff]  ;;  %v85_v0 = vld [vmem:[%s2206_s0 + $0x230] sm:$0xff]  ;;  %s958_s13 = scalar_lea.vmem %s938_s12, 128 }
   0xa   :  { %v417_v60 = vsel %vm271_vm0, %v83_v50, 0.0  ;;  %v289_v1 = vsel %vm271_vm0, %v24_v55, 0.0  ;;  %v419_v2 = vsel %vm271_vm0, %v84_v56, 0.0  ;;  %v25_v3 = vld [vmem:[%s2206_s0 + $0x50] sm:$0xff]  ;;  %v356_v6 = vsel %vm271_vm0, %v55_v61, 0.0  ;;  %v56_v7 = vld [vmem:[%s2206_s0 + $0x148] sm:$0xff]  ;;  %p959_p0 = scmp.ne.s32.totalorder %s938_s12, %s958_s13  ;;  %p964_p2 = scmp.lt.s32.totalorder %s958_s13, %s958_s13 }
   0xb   :  { %v282_v29 = vadd.f32 %v281_v23, %v280_v18  ;;  %v349_v34 = vadd.f32 %v348_v30, %v347_v32  ;;  %v414_v58 = vadd.f32 %v413_v48, %v412_v52  ;;  %v111_v8 = vld [vmem:[%s2206_s0 + $0x300] sm:$0xff]  ;;  %v112_v9 = vld [vmem:[%s2206_s0 + $0x308] sm:$0xff]  ;;  %v421_v12 = vsel %vm271_vm0, %v85_v0, 0.0  ;;  %v86_v13 = vld [vmem:[%s2206_s0 + $0x238] sm:$0xff] }
   0xc   :  { %v113_v14 = vld [vmem:[%s2206_s0 + $0x310] sm:$0xff]  ;;  %v291_v15 = vsel %vm271_vm0, %v25_v3, 0.0  ;;  %v26_v16 = vld [vmem:[%s2206_s0 + $0x58] sm:$0xff]  ;;  %v358_v19 = vsel %vm271_vm0, %v56_v7, 0.0  ;;  %v479_v21 = vsel %vm271_vm0, %v111_v8, 0.0  ;;  %v480_v22 = vsel %vm271_vm0, %v112_v9, 0.0  ;;  %p965_p3 = por %p964_p2, %p963_p1 }
   0xd   :  { %v284_v37 = vadd.f32 %v283_v31, %v282_v29  ;;  %v351_v44 = vadd.f32 %v350_v35, %v349_v34  ;;  %v416_v63 = vadd.f32 %v415_v54, %v414_v58  ;;  %v114_v17 = vld [vmem:[%s2206_s0 + $0x318] sm:$0xff]  ;;  %v57_v23 = vld [vmem:[%s2206_s0 + $0x150] sm:$0xff]  ;;  %v115_v24 = vld [vmem:[%s2206_s0 + $0x320] sm:$0xff]  ;;  %v423_v26 = vsel %vm271_vm0, %v86_v13, 0.0 }
   0xe   :  { %v481_v27 = vadd.f32 %v480_v22, %v479_v21  ;;  %v482_v28 = vsel %vm271_vm0, %v113_v14, 0.0  ;;  %v87_v29 = vld [vmem:[%s2206_s0 + $0x240] sm:$0xff]  ;;  %v293_v30 = vsel %vm271_vm0, %v26_v16, 0.0  ;;  %v484_v31 = vsel %vm271_vm0, %v114_v17, 0.0  ;;  %v116_v33 = vld [vmem:[%s2206_s0 + $0x328] sm:$0xff]  ;;  %v58_v39 = vld [vmem:[%s2206_s0 + $0x158] sm:$0xff]  ;;  %p966_p4 = pnand %p965_p3, %p959_p0 }
   0xf   :  { %v286_v51 = vadd.f32 %v285_v40, %v284_v37  ;;  %v353_v57 = vadd.f32 %v352_v46, %v351_v44  ;;  %v418_v5 = vadd.f32 %v417_v60, %v416_v63  ;;  %v27_v32 = vld [vmem:[%s2206_s0 + $0x60] sm:$0xff]  ;;  %v360_v36 = vsel %vm271_vm0, %v57_v23, 0.0  ;;  %v117_v40 = vld [vmem:[%s2206_s0 + $0x330] sm:$0xff]  ;;  %v88_v44 = vld [vmem:[%s2206_s0 + $0x248] sm:$0xff] }
  0x10   :  { %v483_v35 = vadd.f32 %v482_v28, %v481_v27  ;;  %v486_v38 = vsel %vm271_vm0, %v115_v24, 0.0  ;;  %v425_v42 = vsel %vm271_vm0, %v87_v29, 0.0  ;;  %v295_v45 = vsel %vm271_vm0, %v27_v32, 0.0  ;;  %v28_v47 = vld [vmem:[%s2206_s0 + $0x68] sm:$0xff]  ;;  %v118_v48 = vld [vmem:[%s2206_s0 + $0x338] sm:$0xff]  ;;  %v59_v54 = vld [vmem:[%s2206_s0 + $0x160] sm:$0xff] }
  0x11   :  { %v288_v62 = vadd.f32 %v287_v53, %v286_v51  ;;  %v355_v4 = vadd.f32 %v354_v59, %v353_v57  ;;  %v420_v11 = vadd.f32 %v419_v2, %v418_v5  ;;  %v488_v46 = vsel %vm271_vm0, %v116_v33, 0.0  ;;  %v29_v58 = vld [vmem:[%s2206_s0 + $0x70] sm:$0xff]  ;;  %v30_v59 = vld [vmem:[%s2206_s0 + $0x78] sm:$0xff]  ;;  %v31_v63 = vld [vmem:[%s2206_s0 + $0x80] sm:$0xff] }
  0x12   :  { %v485_v43 = vadd.f32 %v484_v31, %v483_v35  ;;  %v362_v51 = vsel %vm271_vm0, %v58_v39, 0.0  ;;  %v490_v53 = vsel %vm271_vm0, %v117_v40, 0.0  ;;  %v427_v56 = vsel %vm271_vm0, %v88_v44, 0.0  ;;  %v89_v60 = vld [vmem:[%s2206_s0 + $0x250] sm:$0xff]  ;;  %v32_v0 = vld [vmem:[%s2206_s0 + $0x88] sm:$0xff]  ;;  %v34_v5 = vld [vmem:[%s2206_s0 + $0x98] sm:$0xff] }
  0x13   :  { %v290_v10 = vadd.f32 %v289_v1, %v288_v62  ;;  %v357_v18 = vadd.f32 %v356_v6, %v355_v4  ;;  %v422_v20 = vadd.f32 %v421_v12, %v420_v11  ;;  %v297_v61 = vsel %vm271_vm0, %v28_v47, 0.0  ;;  %v119_v1 = vld [vmem:[%s2206_s0 + $0x340] sm:$0xff]  ;;  %v33_v4 = vld [vmem:[%s2206_s0 + $0x90] sm:$0xff]  ;;  %v60_v9 = vld [vmem:[%s2206_s0 + $0x168] sm:$0xff] }
  0x14   :  { %v487_v50 = vadd.f32 %v486_v38, %v485_v43  ;;  %v492_v62 = vsel %vm271_vm0, %v118_v48, 0.0  ;;  %v35_v6 = vld [vmem:[%s2206_s0 + $0xa0] sm:$0xff]  ;;  %v364_v7 = vsel %vm271_vm0, %v59_v54, 0.0  ;;  %v144_v11 = vld [vmem:[%s2206_s0 + $0x408] sm:$0xff]  ;;  %v299_v13 = vsel %vm271_vm0, %v29_v58, 0.0  ;;  %v90_v17 = vld [vmem:[%s2206_s0 + $0x258] sm:$0xff] }
  0x15   :  { %v292_v25 = vadd.f32 %v291_v15, %v290_v10  ;;  %v359_v34 = vadd.f32 %v358_v19, %v357_v18  ;;  %v424_v37 = vadd.f32 %v423_v26, %v422_v20  ;;  %v143_v10 = vld [vmem:[%s2206_s0 + $0x400] sm:$0xff]  ;;  %v429_v14 = vsel %vm271_vm0, %v89_v60, 0.0  ;;  %v36_v16 = vld [vmem:[%s2206_s0 + $0xa8] sm:$0xff]  ;;  %v145_v23 = vld [vmem:[%s2206_s0 + $0x410] sm:$0xff] }
  0x16   :  { %v489_v57 = vadd.f32 %v488_v46, %v487_v50  ;;  %v301_v18 = vsel %vm271_vm0, %v30_v59, 0.0  ;;  %v1229_v19 = vsel %vm271_vm0, %v31_v63, 0.0  ;;  %v1232_v20 = vsel %vm271_vm0, %v32_v0, 0.0  ;;  %v120_v22 = vld [vmem:[%s2206_s0 + $0x348] sm:$0xff]  ;;  %v146_v24 = vld [vmem:[%s2206_s0 + $0x418] sm:$0xff]  ;;  %v37_v29 = vld [vmem:[%s2206_s0 + $0xb0] sm:$0xff] }
  0x17   :  { %v294_v41 = vadd.f32 %v293_v30, %v292_v25  ;;  %v361_v49 = vadd.f32 %v360_v36, %v359_v34  ;;  %v426_v52 = vadd.f32 %v425_v42, %v424_v37  ;;  %v494_v21 = vsel %vm271_vm0, %v119_v1, 0.0  ;;  %v38_v30 = vld [vmem:[%s2206_s0 + $0xb8] sm:$0xff]  ;;  %v39_v35 = vld [vmem:[%s2206_s0 + $0xc0] sm:$0xff]  ;;  %v61_v36 = vld [vmem:[%s2206_s0 + $0x170] sm:$0xff] }
  0x18   :  { %v491_v3 = vadd.f32 %v490_v53, %v489_v57  ;;  %v1245_v25 = vsel %vm271_vm0, %v33_v4, 0.0  ;;  %v1248_v26 = vsel %vm271_vm0, %v34_v5, 0.0  ;;  %v1251_v27 = vsel %vm271_vm0, %v35_v6, 0.0  ;;  %v147_v37 = vld [vmem:[%s2206_s0 + $0x420] sm:$0xff]  ;;  %v40_v42 = vld [vmem:[%s2206_s0 + $0xc8] sm:$0xff]  ;;  %v41_v48 = vld [vmem:[%s2206_s0 + $0xd0] sm:$0xff] }
  0x19   :  { %v296_v55 = vadd.f32 %v295_v45, %v294_v41  ;;  %v363_v2 = vadd.f32 %v362_v51, %v361_v49  ;;  %v428_v8 = vadd.f32 %v427_v56, %v426_v52  ;;  %v366_v31 = vsel %vm271_vm0, %v60_v9, 0.0  ;;  %v91_v43 = vld [vmem:[%s2206_s0 + $0x260] sm:$0xff]  ;;  %v121_v49 = vld [vmem:[%s2206_s0 + $0x350] sm:$0xff]  ;;  %v148_v50 = vld [vmem:[%s2206_s0 + $0x428] sm:$0xff] }
  0x1a   :  { %v493_v15 = vadd.f32 %v492_v62, %v491_v3  ;;  %v548_v33 = vsel %vm271_vm0, %v143_v10, 0.0  ;;  %v549_v34 = vsel %vm271_vm0, %v144_v11, 0.0  ;;  %v431_v39 = vsel %vm271_vm0, %v90_v17, 0.0  ;;  %v43_v56 = vld [vmem:[%s2206_s0 + $0xe0] sm:$0xff]  ;;  %v62_v62 = vld [vmem:[%s2206_s0 + $0x178] sm:$0xff]  ;;  %v149_v63 = vld [vmem:[%s2206_s0 + $0x430] sm:$0xff] }
  0x1b   :  { %v298_v12 = vadd.f32 %v297_v61, %v296_v55  ;;  %v365_v28 = vadd.f32 %v364_v7, %v363_v2  ;;  %v430_v32 = vadd.f32 %v429_v14, %v428_v8  ;;  %v550_v41 = vadd.f32 %v549_v34, %v548_v33  ;;  %v42_v55 = vld [vmem:[%s2206_s0 + $0xd8] sm:$0xff]  ;;  %v44_v61 = vld [vmem:[%s2206_s0 + $0xe8] sm:$0xff]  ;;  %v45_v4 = vld [vmem:[%s2206_s0 + $0xf0] sm:$0xff] }
  0x1c   :  { %v495_v40 = vadd.f32 %v494_v21, %v493_v15  ;;  %v1279_v44 = vsel %vm271_vm0, %v36_v16, 0.0  ;;  %v496_v45 = vsel %vm271_vm0, %v120_v22, 0.0  ;;  %v551_v46 = vsel %vm271_vm0, %v145_v23, 0.0  ;;  %v92_v5 = vld [vmem:[%s2206_s0 + $0x268] sm:$0xff]  ;;  %v46_v10 = vld [vmem:[%s2206_s0 + $0xf8] sm:$0xff]  ;;  %v63_v17 = vld [vmem:[%s2206_s0 + $0x180] sm:$0xff] }
  0x1d   :  { %v300_v38 = vadd.f32 %v299_v13, %v298_v12  ;;  %v553_v47 = vsel %vm271_vm0, %v146_v24, 0.0  ;;  %v1294_v51 = vsel %vm271_vm0, %v37_v29, 0.0  ;;  %v1297_v52 = vsel %vm271_vm0, %v38_v30, 0.0  ;;  %v122_v11 = vld [vmem:[%s2206_s0 + $0x358] sm:$0xff]  ;;  %v151_v30 = vld [vmem:[%s2206_s0 + $0x440] sm:$0xff] }
  0x1e   :  { %v367_v53 = vadd.f32 %v366_v31, %v365_v28  ;;  %v552_v54 = vadd.f32 %v551_v46, %v550_v41  ;;  %v1306_v57 = vsel %vm271_vm0, %v39_v35, 0.0  ;;  %v368_v58 = vsel %vm271_vm0, %v61_v36, 0.0  ;;  %v150_v12 = vld [vmem:[%s2206_s0 + $0x438] sm:$0xff]  ;;  %v65_v28 = vld [vmem:[%s2206_s0 + $0x190] sm:$0xff]  ;;  %v67_v35 = vld [vmem:[%s2206_s0 + $0x1a0] sm:$0xff] }
  0x1f   :  { %v432_v59 = vadd.f32 %v431_v39, %v430_v32  ;;  %v555_v60 = vsel %vm271_vm0, %v147_v37, 0.0  ;;  %v302_v0 = vadd.f32 %v301_v18, %v300_v38  ;;  %v433_v1 = vsel %vm271_vm0, %v91_v43, 0.0  ;;  %v64_v18 = vld [vmem:[%s2206_s0 + $0x188] sm:$0xff]  ;;  %v66_v29 = vld [vmem:[%s2206_s0 + $0x198] sm:$0xff]  ;;  %v93_v36 = vld [vmem:[%s2206_s0 + $0x270] sm:$0xff] }
  0x20   :  { %v497_v2 = vadd.f32 %v496_v45, %v495_v40  ;;  %v554_v3 = vadd.f32 %v553_v47, %v552_v54  ;;  %v1327_v6 = vsel %vm271_vm0, %v40_v42, 0.0  ;;  %v1330_v7 = vsel %vm271_vm0, %v41_v48, 0.0  ;;  %v68_v40 = vld [vmem:[%s2206_s0 + $0x1a8] sm:$0xff]  ;;  %v123_v41 = vld [vmem:[%s2206_s0 + $0x360] sm:$0xff]  ;;  %v69_v48 = vld [vmem:[%s2206_s0 + $0x1b0] sm:$0xff] }
  0x21   :  { %v498_v8 = vsel %vm271_vm0, %v121_v49, 0.0  ;;  %v557_v9 = vsel %vm271_vm0, %v148_v50, 0.0  ;;  %v1344_v13 = vsel %vm271_vm0, %v42_v55, 0.0  ;;  %v1347_v14 = vsel %vm271_vm0, %v43_v56, 0.0  ;;  %v152_v42 = vld [vmem:[%s2206_s0 + $0x448] sm:$0xff]  ;;  %v70_v49 = vld [vmem:[%s2206_s0 + $0x1b8] sm:$0xff] }
  0x22   :  { %v369_v15 = vadd.f32 %v368_v58, %v367_v53  ;;  %v556_v16 = vadd.f32 %v555_v60, %v554_v3  ;;  %v1356_v21 = vsel %vm271_vm0, %v44_v61, 0.0  ;;  %v370_v22 = vsel %vm271_vm0, %v62_v62, 0.0  ;;  %v71_v56 = vld [vmem:[%s2206_s0 + $0x1c0] sm:$0xff]  ;;  %v72_v58 = vld [vmem:[%s2206_s0 + $0x1c8] sm:$0xff] }
  0x23   :  { %v434_v23 = vadd.f32 %v433_v1, %v432_v59  ;;  %v559_v24 = vsel %vm271_vm0, %v149_v63, 0.0  ;;  %v304_v31 = vadd.f32 %v1229_v19, %v302_v0  ;;  %v435_v32 = vsel %vm271_vm0, %v92_v5, 0.0  ;;  %v153_v59 = vld [vmem:[%s2206_s0 + $0x450] sm:$0xff]  ;;  %v94_v1 = vld [vmem:[%s2206_s0 + $0x278] sm:$0xff] }
  0x24   :  { %v499_v33 = vadd.f32 %v498_v8, %v497_v2  ;;  %v558_v34 = vadd.f32 %v557_v9, %v556_v16  ;;  %v1378_v37 = vsel %vm271_vm0, %v45_v4, 0.0  ;;  %v1381_v38 = vsel %vm271_vm0, %v46_v10, 0.0  ;;  %v73_v0 = vld [vmem:[%s2206_s0 + $0x1d0] sm:$0xff]  ;;  %v74_v5 = vld [vmem:[%s2206_s0 + $0x1d8] sm:$0xff]  ;;  %v124_v8 = vld [vmem:[%s2206_s0 + $0x368] sm:$0xff] }
  0x25   :  { %v500_v19 = vsel %vm271_vm0, %v122_v11, 0.0  ;;  %v561_v39 = vsel %vm271_vm0, %v150_v12, 0.0  ;;  %v371_v43 = vadd.f32 %v370_v22, %v369_v15  ;;  %v372_v45 = vsel %vm271_vm0, %v63_v17, 0.0  ;;  %v154_v9 = vld [vmem:[%s2206_s0 + $0x458] sm:$0xff]  ;;  %v75_v16 = vld [vmem:[%s2206_s0 + $0x1e0] sm:$0xff]  ;;  %v76_v17 = vld [vmem:[%s2206_s0 + $0x1e8] sm:$0xff] }
  0x26   :  { %v374_v46 = vsel %vm271_vm0, %v64_v18, 0.0  ;;  %v560_v47 = vadd.f32 %v559_v24, %v558_v34  ;;  %v1403_v50 = vsel %vm271_vm0, %v65_v28, 0.0  ;;  %v1406_v53 = vsel %vm271_vm0, %v66_v29, 0.0  ;;  %v77_v28 = vld [vmem:[%s2206_s0 + $0x1f0] sm:$0xff]  ;;  %v78_v29 = vld [vmem:[%s2206_s0 + $0x1f8] sm:$0xff] }
  0x27   :  { %v436_v54 = vadd.f32 %v435_v32, %v434_v23  ;;  %v563_v55 = vsel %vm271_vm0, %v151_v30, 0.0  ;;  %v306_v60 = vadd.f32 %v1232_v20, %v304_v31  ;;  %v437_v61 = vsel %vm271_vm0, %v93_v36, 0.0  ;;  %v155_v30 = vld [vmem:[%s2206_s0 + $0x460] sm:$0xff]  ;;  %v125_v36 = vld [vmem:[%s2206_s0 + $0x370] sm:$0xff] }
  0x28   :  { %v501_v62 = vadd.f32 %v500_v19, %v499_v33  ;;  %v562_v63 = vadd.f32 %v561_v39, %v560_v47  ;;  %v1427_v2 = vsel %vm271_vm0, %v67_v35, 0.0  ;;  %v1430_v3 = vsel %vm271_vm0, %v68_v40, 0.0  ;;  %v95_v35 = vld [vmem:[%s2206_s0 + $0x280] sm:$0xff] }
  0x29   :  { %v502_v20 = vsel %vm271_vm0, %v123_v41, 0.0  ;;  %v565_v4 = vsel %vm271_vm0, %v152_v42, 0.0  ;;  %v373_v10 = vadd.f32 %v372_v45, %v371_v43  ;;  %v1444_v11 = vsel %vm271_vm0, %v69_v48, 0.0  ;;  %v156_v41 = vld [vmem:[%s2206_s0 + $0x468] sm:$0xff]  ;;  %v175_v42 = vld [vmem:[%s2206_s0 + $0x500] sm:$0xff] }
  0x2a   :  { %v1447_v12 = vsel %vm271_vm0, %v70_v49, 0.0  ;;  %v564_v15 = vadd.f32 %v563_v55, %v562_v63  ;;  %v1456_v18 = vsel %vm271_vm0, %v71_v56, 0.0  ;;  %v1459_v22 = vsel %vm271_vm0, %v72_v58, 0.0  ;;  %v176_v43 = vld [vmem:[%s2206_s0 + $0x508] sm:$0xff]  ;;  %v177_v55 = vld [vmem:[%s2206_s0 + $0x510] sm:$0xff] }
  0x2b   :  { %v438_v23 = vadd.f32 %v437_v61, %v436_v54  ;;  %v567_v24 = vsel %vm271_vm0, %v153_v59, 0.0  ;;  %v308_v31 = vadd.f32 %v1245_v25, %v306_v60  ;;  %v439_v32 = vsel %vm271_vm0, %v94_v1, 0.0  ;;  %v96_v54 = vld [vmem:[%s2206_s0 + $0x288] sm:$0xff]  ;;  %v97_v60 = vld [vmem:[%s2206_s0 + $0x290] sm:$0xff]  ;;  %v98_v61 = vld [vmem:[%s2206_s0 + $0x298] sm:$0xff] }
  0x2c   :  { %v503_v33 = vadd.f32 %v502_v20, %v501_v62  ;;  %v566_v34 = vadd.f32 %v565_v4, %v564_v15  ;;  %v1480_v19 = vsel %vm271_vm0, %v73_v0, 0.0  ;;  %v1483_v39 = vsel %vm271_vm0, %v74_v5, 0.0  ;;  %v157_v20 = vld [vmem:[%s2206_s0 + $0x470] sm:$0xff]  ;;  %v178_v4 = vld [vmem:[%s2206_s0 + $0x518] sm:$0xff] }
  0x2d   :  { %v504_v25 = vsel %vm271_vm0, %v124_v8, 0.0  ;;  %v569_v40 = vsel %vm271_vm0, %v154_v9, 0.0  ;;  %v375_v45 = vadd.f32 %v374_v46, %v373_v10  ;;  %v1497_v47 = vsel %vm271_vm0, %v75_v16, 0.0  ;;  %v99_v10 = vld [vmem:[%s2206_s0 + $0x2a0] sm:$0xff]  ;;  %v126_v15 = vld [vmem:[%s2206_s0 + $0x378] sm:$0xff] }
  0x2e   :  { %v1500_v48 = vsel %vm271_vm0, %v76_v17, 0.0  ;;  %v568_v49 = vadd.f32 %v567_v24, %v566_v34  ;;  %v1509_v56 = vsel %vm271_vm0, %v77_v28, 0.0  ;;  %v1512_v46 = vsel %vm271_vm0, %v78_v29, 0.0  ;;  %v100_v28 = vld [vmem:[%s2206_s0 + $0x2a8] sm:$0xff]  ;;  %v101_v29 = vld [vmem:[%s2206_s0 + $0x2b0] sm:$0xff]  ;;  %v102_v34 = vld [vmem:[%s2206_s0 + $0x2b8] sm:$0xff] }
  0x2f   :  { %v440_v58 = vadd.f32 %v439_v32, %v438_v23  ;;  %v571_v59 = vsel %vm271_vm0, %v155_v30, 0.0  ;;  %v310_v62 = vadd.f32 %v1248_v26, %v308_v31  ;;  %v441_v63 = vsel %vm271_vm0, %v95_v35, 0.0  ;;  %v179_v30 = vld [vmem:[%s2206_s0 + $0x520] sm:$0xff] }
  0x30   :  { %v505_v0 = vadd.f32 %v504_v25, %v503_v33  ;;  %v570_v1 = vadd.f32 %v569_v40, %v568_v49  ;;  %v506_v5 = vsel %vm271_vm0, %v125_v36, 0.0  ;;  %v573_v8 = vsel %vm271_vm0, %v156_v41, 0.0  ;;  %v103_v41 = vld [vmem:[%s2206_s0 + $0x2c0] sm:$0xff] }
  0x31   :  { %v617_v9 = vsel %vm271_vm0, %v175_v42, 0.0  ;;  %v618_v26 = vsel %vm271_vm0, %v176_v43, 0.0  ;;  %v377_v16 = vadd.f32 %v1403_v50, %v375_v45  ;;  %v443_v17 = vsel %vm271_vm0, %v96_v54, 0.0  ;;  %v158_v42 = vld [vmem:[%s2206_s0 + $0x478] sm:$0xff]  ;;  %v180_v43 = vld [vmem:[%s2206_s0 + $0x528] sm:$0xff] }
  0x32   :  { %v572_v23 = vadd.f32 %v571_v59, %v570_v1  ;;  %v620_v24 = vsel %vm271_vm0, %v177_v55, 0.0  ;;  %v442_v31 = vadd.f32 %v441_v63, %v440_v58  ;;  %v445_v50 = vsel %vm271_vm0, %v97_v60, 0.0  ;;  %v104_v58 = vld [vmem:[%s2206_s0 + $0x2c8] sm:$0xff]  ;;  %v127_v59 = vld [vmem:[%s2206_s0 + $0x380] sm:$0xff]  ;;  %v105_v63 = vld [vmem:[%s2206_s0 + $0x2d0] sm:$0xff] }
  0x33   :  { %v1553_v32 = vsel %vm271_vm0, %v98_v61, 0.0  ;;  %v619_v33 = vadd.f32 %v618_v26, %v617_v9  ;;  %v507_v35 = vadd.f32 %v506_v5, %v505_v0  ;;  %v575_v25 = vsel %vm271_vm0, %v157_v20, 0.0  ;;  %v106_v0 = vld [vmem:[%s2206_s0 + $0x2d8] sm:$0xff] }
  0x34   :  { %v574_v36 = vadd.f32 %v573_v8, %v572_v23  ;;  %v622_v40 = vsel %vm271_vm0, %v178_v4, 0.0  ;;  %v312_v45 = vadd.f32 %v1251_v27, %v310_v62  ;;  %v1571_v49 = vsel %vm271_vm0, %v99_v10, 0.0  ;;  %v107_v8 = vld [vmem:[%s2206_s0 + $0x2e0] sm:$0xff]  ;;  %v182_v23 = vld [vmem:[%s2206_s0 + $0x538] sm:$0xff] }
  0x35   :  { %v508_v54 = vsel %vm271_vm0, %v126_v15, 0.0  ;;  %v621_v55 = vadd.f32 %v620_v24, %v619_v33  ;;  %v379_v60 = vadd.f32 %v1406_v53, %v377_v16  ;;  %v1582_v61 = vsel %vm271_vm0, %v100_v28, 0.0  ;;  %v181_v53 = vld [vmem:[%s2206_s0 + $0x530] sm:$0xff]  ;;  %v108_v16 = vld [vmem:[%s2206_s0 + $0x2e8] sm:$0xff] }
  0x36   :  { %v1585_v27 = vsel %vm271_vm0, %v101_v29, 0.0  ;;  %v624_v62 = vsel %vm271_vm0, %v179_v30, 0.0  ;;  %v444_v1 = vadd.f32 %v443_v17, %v442_v31  ;;  %v1598_v20 = vsel %vm271_vm0, %v102_v34, 0.0  ;;  %v159_v17 = vld [vmem:[%s2206_s0 + $0x480] sm:$0xff]  ;;  %v109_v31 = vld [vmem:[%s2206_s0 + $0x2f0] sm:$0xff]  ;;  %v128_v33 = vld [vmem:[%s2206_s0 + $0x388] sm:$0xff] }
  0x37   :  { %v576_v4 = vadd.f32 %v575_v25, %v574_v36  ;;  %v623_v5 = vadd.f32 %v622_v40, %v621_v55  ;;  %v1604_v9 = vsel %vm271_vm0, %v103_v41, 0.0  ;;  %v509_v26 = vadd.f32 %v508_v54, %v507_v35  ;;  %v110_v25 = vld [vmem:[%s2206_s0 + $0x2f8] sm:$0xff]  ;;  %v129_v40 = vld [vmem:[%s2206_s0 + $0x390] sm:$0xff] }
  0x38   :  { %v577_v10 = vsel %vm271_vm0, %v158_v42, 0.0  ;;  %v626_v15 = vsel %vm271_vm0, %v180_v43, 0.0  ;;  %v314_v24 = vadd.f32 %v1279_v44, %v312_v45  ;;  %v1619_v28 = vsel %vm271_vm0, %v104_v58, 0.0  ;;  %v130_v54 = vld [vmem:[%s2206_s0 + $0x398] sm:$0xff] }
  0x39   :  { %v510_v29 = vsel %vm271_vm0, %v127_v59, 0.0  ;;  %v625_v30 = vadd.f32 %v624_v62, %v623_v5  ;;  %v381_v34 = vadd.f32 %v1427_v2, %v379_v60  ;;  %v1630_v35 = vsel %vm271_vm0, %v105_v63, 0.0  ;;  %v183_v2 = vld [vmem:[%s2206_s0 + $0x540] sm:$0xff]  ;;  %v160_v62 = vld [vmem:[%s2206_s0 + $0x488] sm:$0xff] }
  0x3a   :  { %v1633_v44 = vsel %vm271_vm0, %v106_v0, 0.0  ;;  %v628_v36 = vsel %vm271_vm0, %v181_v53, 0.0  ;;  %v446_v41 = vadd.f32 %v445_v50, %v444_v1  ;;  %v1646_v42 = vsel %vm271_vm0, %v107_v8, 0.0  ;;  %v131_v50 = vld [vmem:[%s2206_s0 + $0x3a0] sm:$0xff]  ;;  %v184_v63 = vld [vmem:[%s2206_s0 + $0x548] sm:$0xff]  ;;  %v133_v8 = vld [vmem:[%s2206_s0 + $0x3b0] sm:$0xff] }
  0x3b   :  { %v578_v43 = vadd.f32 %v577_v10, %v576_v4  ;;  %v627_v45 = vadd.f32 %v626_v15, %v625_v30  ;;  %v1652_v55 = vsel %vm271_vm0, %v108_v16, 0.0  ;;  %v511_v58 = vadd.f32 %v510_v29, %v509_v26  ;;  %v132_v5 = vld [vmem:[%s2206_s0 + $0x3a8] sm:$0xff]  ;;  %v134_v16 = vld [vmem:[%s2206_s0 + $0x3b8] sm:$0xff] }
  0x3c   :  { %v579_v59 = vsel %vm271_vm0, %v159_v17, 0.0  ;;  %v630_v60 = vsel %vm271_vm0, %v182_v23, 0.0  ;;  %v316_v0 = vadd.f32 %v1294_v51, %v314_v24  ;;  %v1667_v53 = vsel %vm271_vm0, %v109_v31, 0.0  ;;  %v135_v17 = vld [vmem:[%s2206_s0 + $0x3c0] sm:$0xff]  ;;  %v185_v23 = vld [vmem:[%s2206_s0 + $0x550] sm:$0xff]  ;;  %v136_v31 = vld [vmem:[%s2206_s0 + $0x3c8] sm:$0xff] }
  0x3d   :  { %v512_v1 = vsel %vm271_vm0, %v128_v33, 0.0  ;;  %v629_v4 = vadd.f32 %v628_v36, %v627_v45  ;;  %v383_v26 = vadd.f32 %v1430_v3, %v381_v34  ;;  %v1678_v10 = vsel %vm271_vm0, %v110_v25, 0.0 }
  0x3e   :  { %v514_v51 = vsel %vm271_vm0, %v129_v40, 0.0  ;;  %v632_v15 = vsel %vm271_vm0, %v183_v2, 0.0  ;;  %v448_v3 = vadd.f32 %v1553_v32, %v446_v41  ;;  %v516_v24 = vsel %vm271_vm0, %v130_v54, 0.0  ;;  %v161_v32 = vld [vmem:[%s2206_s0 + $0x490] sm:$0xff]  ;;  %v186_v40 = vld [vmem:[%s2206_s0 + $0x558] sm:$0xff]  ;;  %v207_v2 = vld [vmem:[%s2206_s0 + $0x600] sm:$0xff] }
  0x3f   :  { %v580_v29 = vadd.f32 %v579_v59, %v578_v43  ;;  %v631_v30 = vadd.f32 %v630_v60, %v629_v4  ;;  %v513_v33 = vadd.f32 %v512_v1, %v511_v58  ;;  %v1697_v34 = vsel %vm271_vm0, %v131_v50, 0.0  ;;  %v208_v58 = vld [vmem:[%s2206_s0 + $0x608] sm:$0xff]  ;;  %v209_v59 = vld [vmem:[%s2206_s0 + $0x610] sm:$0xff] }
  0x40   :  { %v581_v36 = vsel %vm271_vm0, %v160_v62, 0.0  ;;  %v634_v25 = vsel %vm271_vm0, %v184_v63, 0.0  ;;  %v318_v41 = vadd.f32 %v1297_v52, %v316_v0  ;;  %v1712_v43 = vsel %vm271_vm0, %v132_v5, 0.0  ;;  %v137_v63 = vld [vmem:[%s2206_s0 + $0x3d0] sm:$0xff]  ;;  %v187_v0 = vld [vmem:[%s2206_s0 + $0x560] sm:$0xff] }
  0x41   :  { %v1715_v45 = vsel %vm271_vm0, %v133_v8, 0.0  ;;  %v633_v54 = vadd.f32 %v632_v15, %v631_v30  ;;  %v385_v60 = vadd.f32 %v1444_v11, %v383_v26  ;;  %v1725_v50 = vsel %vm271_vm0, %v134_v16, 0.0  ;;  %v162_v8 = vld [vmem:[%s2206_s0 + $0x498] sm:$0xff] }
  0x42   :  { %v1728_v52 = vsel %vm271_vm0, %v135_v17, 0.0  ;;  %v636_v62 = vsel %vm271_vm0, %v185_v23, 0.0  ;;  %v450_v1 = vadd.f32 %v1571_v49, %v448_v3  ;;  %v1739_v11 = vsel %vm271_vm0, %v136_v31, 0.0  ;;  %v210_v26 = vld [vmem:[%s2206_s0 + $0x618] sm:$0xff]  ;;  %v188_v23 = vld [vmem:[%s2206_s0 + $0x568] sm:$0xff] }
  0x43   :  { %v582_v4 = vadd.f32 %v581_v36, %v580_v29  ;;  %v635_v5 = vadd.f32 %v634_v25, %v633_v54  ;;  %v515_v15 = vadd.f32 %v514_v51, %v513_v33  ;;  %v583_v16 = vsel %vm271_vm0, %v161_v32, 0.0  ;;  %v138_v51 = vld [vmem:[%s2206_s0 + $0x3d8] sm:$0xff]  ;;  %v211_v33 = vld [vmem:[%s2206_s0 + $0x620] sm:$0xff] }
  0x44   :  { %v638_v17 = vsel %vm271_vm0, %v186_v40, 0.0  ;;  %v686_v49 = vsel %vm271_vm0, %v207_v2, 0.0  ;;  %v320_v3 = vadd.f32 %v1306_v57, %v318_v41  ;;  %v687_v30 = vsel %vm271_vm0, %v208_v58, 0.0  ;;  %v139_v40 = vld [vmem:[%s2206_s0 + $0x3e0] sm:$0xff]  ;;  %v189_v2 = vld [vmem:[%s2206_s0 + $0x570] sm:$0xff] }
  0x45   :  { %v637_v29 = vadd.f32 %v636_v62, %v635_v5  ;;  %v689_v31 = vsel %vm271_vm0, %v209_v59, 0.0  ;;  %v387_v36 = vadd.f32 %v1447_v12, %v385_v60  ;;  %v1764_v25 = vsel %vm271_vm0, %v137_v63, 0.0  ;;  %v163_v59 = vld [vmem:[%s2206_s0 + $0x4a0] sm:$0xff]  ;;  %v212_v60 = vld [vmem:[%s2206_s0 + $0x628] sm:$0xff] }
  0x46   :  { %v640_v57 = vsel %vm271_vm0, %v187_v0, 0.0  ;;  %v688_v32 = vadd.f32 %v687_v30, %v686_v49  ;;  %v584_v41 = vadd.f32 %v583_v16, %v582_v4  ;;  %v585_v54 = vsel %vm271_vm0, %v162_v8, 0.0  ;;  %v190_v4 = vld [vmem:[%s2206_s0 + $0x578] sm:$0xff] }
  0x47   :  { %v639_v58 = vadd.f32 %v638_v17, %v637_v29  ;;  %v691_v12 = vsel %vm271_vm0, %v210_v26, 0.0  ;;  %v452_v62 = vadd.f32 %v1582_v61, %v450_v1  ;;  %v517_v63 = vadd.f32 %v516_v24, %v515_v15  ;;  %v140_v61 = vld [vmem:[%s2206_s0 + $0x3e8] sm:$0xff]  ;;  %v213_v24 = vld [vmem:[%s2206_s0 + $0x630] sm:$0xff] }
  0x48   :  { %v642_v0 = vsel %vm271_vm0, %v188_v23, 0.0  ;;  %v690_v5 = vadd.f32 %v689_v31, %v688_v32  ;;  %v322_v8 = vadd.f32 %v1327_v6, %v320_v3  ;;  %v1788_v26 = vsel %vm271_vm0, %v138_v51, 0.0  ;;  %v141_v23 = vld [vmem:[%s2206_s0 + $0x3f0] sm:$0xff]  ;;  %v191_v3 = vld [vmem:[%s2206_s0 + $0x580] sm:$0xff]  ;;  %v164_v51 = vld [vmem:[%s2206_s0 + $0x4a8] sm:$0xff] }
  0x49   :  { %v641_v16 = vadd.f32 %v640_v57, %v639_v58  ;;  %v693_v17 = vsel %vm271_vm0, %v211_v33, 0.0  ;;  %v389_v1 = vadd.f32 %v1456_v18, %v387_v36  ;;  %v1799_v15 = vsel %vm271_vm0, %v139_v40, 0.0  ;;  %v214_v33 = vld [vmem:[%s2206_s0 + $0x638] sm:$0xff] }
  0x4a   :  { %v644_v6 = vsel %vm271_vm0, %v189_v2, 0.0  ;;  %v692_v49 = vadd.f32 %v691_v12, %v690_v5  ;;  %v586_v29 = vadd.f32 %v585_v54, %v584_v41  ;;  %v587_v30 = vsel %vm271_vm0, %v163_v59, 0.0  ;;  %v192_v2 = vld [vmem:[%s2206_s0 + $0x588] sm:$0xff] }
  0x4b   :  { %v643_v31 = vadd.f32 %v642_v0, %v641_v16  ;;  %v695_v18 = vsel %vm271_vm0, %v212_v60, 0.0  ;;  %v454_v36 = vadd.f32 %v1585_v27, %v452_v62  ;;  %v519_v57 = vadd.f32 %v1697_v34, %v517_v63  ;;  %v142_v27 = vld [vmem:[%s2206_s0 + $0x3f8] sm:$0xff]  ;;  %v215_v34 = vld [vmem:[%s2206_s0 + $0x640] sm:$0xff]  ;;  %v165_v63 = vld [vmem:[%s2206_s0 + $0x4b0] sm:$0xff] }
  0x4c   :  { %v646_v32 = vsel %vm271_vm0, %v190_v4, 0.0  ;;  %v694_v40 = vadd.f32 %v693_v17, %v692_v49  ;;  %v324_v41 = vadd.f32 %v1330_v7, %v322_v8  ;;  %v1824_v54 = vsel %vm271_vm0, %v140_v61, 0.0  ;;  %v193_v0 = vld [vmem:[%s2206_s0 + $0x590] sm:$0xff]  ;;  %v166_v16 = vld [vmem:[%s2206_s0 + $0x4b8] sm:$0xff]  ;;  %v216_v17 = vld [vmem:[%s2206_s0 + $0x648] sm:$0xff] }
  0x4d   :  { %v645_v58 = vadd.f32 %v644_v6, %v643_v31  ;;  %v697_v12 = vsel %vm271_vm0, %v213_v24, 0.0  ;;  %v391_v59 = vadd.f32 %v1459_v22, %v389_v1  ;;  %v1835_v60 = vsel %vm271_vm0, %v141_v23, 0.0  ;;  %v194_v49 = vld [vmem:[%s2206_s0 + $0x598] sm:$0xff]  ;;  %v240_v31 = vld [vmem:[%s2206_s0 + $0x708] sm:$0xff] }
  0x4e   :  { %v648_v7 = vsel %vm271_vm0, %v191_v3, 0.0  ;;  %v696_v62 = vadd.f32 %v695_v18, %v694_v40  ;;  %v588_v5 = vadd.f32 %v587_v30, %v586_v29  ;;  %v589_v4 = vsel %vm271_vm0, %v164_v51, 0.0 }
  0x4f   :  { %v647_v8 = vadd.f32 %v646_v32, %v645_v58  ;;  %v699_v22 = vsel %vm271_vm0, %v214_v33, 0.0  ;;  %v456_v61 = vadd.f32 %v1598_v20, %v454_v36  ;;  %v521_v24 = vadd.f32 %v1712_v43, %v519_v57  ;;  %v217_v20 = vld [vmem:[%s2206_s0 + $0x650] sm:$0xff]  ;;  %v239_v43 = vld [vmem:[%s2206_s0 + $0x700] sm:$0xff]  ;;  %v242_v58 = vld [vmem:[%s2206_s0 + $0x718] sm:$0xff] }
  0x50   :  { %v650_v1 = vsel %vm271_vm0, %v192_v2, 0.0  ;;  %v698_v6 = vadd.f32 %v697_v12, %v696_v62  ;;  %v1859_v23 = vadd.f32 %v1344_v13, %v324_v41  ;;  %v1862_v3 = vsel %vm271_vm0, %v142_v27, 0.0  ;;  %v195_v36 = vld [vmem:[%s2206_s0 + $0x5a0] sm:$0xff]  ;;  %v241_v57 = vld [vmem:[%s2206_s0 + $0x710] sm:$0xff] }
  0x51   :  { %v649_v29 = vadd.f32 %v648_v7, %v647_v8  ;;  %v701_v30 = vsel %vm271_vm0, %v215_v34, 0.0  ;;  %v393_v13 = vadd.f32 %v1480_v19, %v391_v59  ;;  %v591_v18 = vsel %vm271_vm0, %v165_v63, 0.0  ;;  %v218_v19 = vld [vmem:[%s2206_s0 + $0x658] sm:$0xff]  ;;  %v196_v7 = vld [vmem:[%s2206_s0 + $0x5a8] sm:$0xff] }
  0x52   :  { %v652_v51 = vsel %vm271_vm0, %v193_v0, 0.0  ;;  %v700_v33 = vadd.f32 %v699_v22, %v698_v6  ;;  %v590_v32 = vadd.f32 %v589_v4, %v588_v5  ;;  %v593_v40 = vsel %vm271_vm0, %v166_v16, 0.0  ;;  %v243_v4 = vld [vmem:[%s2206_s0 + $0x720] sm:$0xff] }
  0x53   :  { %v651_v2 = vadd.f32 %v650_v1, %v649_v29  ;;  %v703_v41 = vsel %vm271_vm0, %v216_v17, 0.0  ;;  %v458_v12 = vadd.f32 %v1604_v9, %v456_v61  ;;  %v523_v27 = vadd.f32 %v1715_v45, %v521_v24  ;;  %v167_v9 = vld [vmem:[%s2206_s0 + $0x4c0] sm:$0xff]  ;;  %v197_v61 = vld [vmem:[%s2206_s0 + $0x5b0] sm:$0xff]  ;;  %v220_v29 = vld [vmem:[%s2206_s0 + $0x668] sm:$0xff] }
  0x54   :  { %v654_v34 = vsel %vm271_vm0, %v194_v49, 0.0  ;;  %v702_v59 = vadd.f32 %v701_v30, %v700_v33  ;;  %v705_v63 = vsel %vm271_vm0, %v217_v20, 0.0  ;;  %v755_v0 = vsel %vm271_vm0, %v239_v43, 0.0  ;;  %v219_v45 = vld [vmem:[%s2206_s0 + $0x660] sm:$0xff]  ;;  %v244_v30 = vld [vmem:[%s2206_s0 + $0x728] sm:$0xff] }
  0x55   :  { %v653_v62 = vadd.f32 %v652_v51, %v651_v2  ;;  %v756_v5 = vsel %vm271_vm0, %v240_v31, 0.0  ;;  %v656_v8 = vsel %vm271_vm0, %v195_v36, 0.0  ;;  %v758_v17 = vsel %vm271_vm0, %v241_v57, 0.0  ;;  %v221_v2 = vld [vmem:[%s2206_s0 + $0x670] sm:$0xff] }
  0x56   :  { %v704_v22 = vadd.f32 %v703_v41, %v702_v59  ;;  %v757_v16 = vadd.f32 %v756_v5, %v755_v0  ;;  %v592_v24 = vadd.f32 %v591_v18, %v590_v32  ;;  %v707_v6 = vsel %vm271_vm0, %v218_v19, 0.0  ;;  %v198_v18 = vld [vmem:[%s2206_s0 + $0x5b8] sm:$0xff]  ;;  %v199_v59 = vld [vmem:[%s2206_s0 + $0x5c0] sm:$0xff] }
  0x57   :  { %v655_v1 = vadd.f32 %v654_v34, %v653_v62  ;;  %v760_v49 = vsel %vm271_vm0, %v242_v58, 0.0  ;;  %v525_v20 = vadd.f32 %v1725_v50, %v523_v27  ;;  %v658_v43 = vsel %vm271_vm0, %v196_v7, 0.0  ;;  %v245_v50 = vld [vmem:[%s2206_s0 + $0x730] sm:$0xff]  ;;  %v168_v34 = vld [vmem:[%s2206_s0 + $0x4c8] sm:$0xff] }
  0x58   :  { %v706_v31 = vadd.f32 %v705_v63, %v704_v22  ;;  %v759_v51 = vadd.f32 %v758_v17, %v757_v16  ;;  %v595_v33 = vsel %vm271_vm0, %v167_v9, 0.0  ;;  %v709_v57 = vsel %vm271_vm0, %v219_v45, 0.0  ;;  %v223_v17 = vld [vmem:[%s2206_s0 + $0x680] sm:$0xff] }
  0x59   :  { %v657_v36 = vadd.f32 %v656_v8, %v655_v1  ;;  %v762_v32 = vsel %vm271_vm0, %v243_v4, 0.0  ;;  %v460_v41 = vadd.f32 %v1619_v28, %v458_v12  ;;  %v660_v19 = vsel %vm271_vm0, %v197_v61, 0.0  ;;  %v222_v28 = vld [vmem:[%s2206_s0 + $0x678] sm:$0xff]  ;;  %v247_v61 = vld [vmem:[%s2206_s0 + $0x740] sm:$0xff] }
  0x5a   :  { %v708_v58 = vadd.f32 %v707_v6, %v706_v31  ;;  %v761_v27 = vadd.f32 %v760_v49, %v759_v51  ;;  %v594_v7 = vadd.f32 %v593_v40, %v592_v24  ;;  %v711_v63 = vsel %vm271_vm0, %v220_v29, 0.0  ;;  %v246_v12 = vld [vmem:[%s2206_s0 + $0x738] sm:$0xff]  ;;  %v248_v31 = vld [vmem:[%s2206_s0 + $0x748] sm:$0xff] }
  0x5b   :  { %v659_v62 = vadd.f32 %v658_v43, %v657_v36  ;;  %v764_v0 = vsel %vm271_vm0, %v244_v30, 0.0  ;;  %v527_v5 = vadd.f32 %v1728_v52, %v525_v20  ;;  %v662_v9 = vsel %vm271_vm0, %v198_v18, 0.0  ;;  %v169_v20 = vld [vmem:[%s2206_s0 + $0x4d0] sm:$0xff]  ;;  %v224_v43 = vld [vmem:[%s2206_s0 + $0x688] sm:$0xff] }
  0x5c   :  { %v710_v45 = vadd.f32 %v709_v57, %v708_v58  ;;  %v763_v4 = vadd.f32 %v762_v32, %v761_v27  ;;  %v395_v40 = vadd.f32 %v1483_v39, %v393_v13  ;;  %v713_v22 = vsel %vm271_vm0, %v221_v2, 0.0  ;;  %v200_v39 = vld [vmem:[%s2206_s0 + $0x5c8] sm:$0xff] }
  0x5d   :  { %v661_v8 = vadd.f32 %v660_v19, %v659_v62  ;;  %v766_v16 = vsel %vm271_vm0, %v245_v50, 0.0  ;;  %v597_v52 = vsel %vm271_vm0, %v168_v34, 0.0  ;;  %v664_v24 = vsel %vm271_vm0, %v199_v59, 0.0  ;;  %v225_v19 = vld [vmem:[%s2206_s0 + $0x690] sm:$0xff]  ;;  %v170_v62 = vld [vmem:[%s2206_s0 + $0x4d8] sm:$0xff] }
  0x5e   :  { %v712_v1 = vadd.f32 %v711_v63, %v710_v45  ;;  %v765_v6 = vadd.f32 %v764_v0, %v763_v4  ;;  %v596_v13 = vadd.f32 %v595_v33, %v594_v7  ;;  %v715_v29 = vsel %vm271_vm0, %v222_v28, 0.0  ;;  %v250_v63 = vld [vmem:[%s2206_s0 + $0x758] sm:$0xff] }
  0x5f   :  { %v663_v49 = vadd.f32 %v662_v9, %v661_v8  ;;  %v768_v30 = vsel %vm271_vm0, %v246_v12, 0.0  ;;  %v462_v51 = vadd.f32 %v1630_v35, %v460_v41  ;;  %v529_v18 = vadd.f32 %v1739_v11, %v527_v5  ;;  %v249_v35 = vld [vmem:[%s2206_s0 + $0x750] sm:$0xff]  ;;  %v227_v8 = vld [vmem:[%s2206_s0 + $0x6a0] sm:$0xff] }
  0x60   :  { %v714_v33 = vadd.f32 %v713_v22, %v712_v1  ;;  %v767_v36 = vadd.f32 %v766_v16, %v765_v6  ;;  %v328_v57 = vadd.f32 %v1347_v14, %v1859_v23  ;;  %v717_v2 = vsel %vm271_vm0, %v223_v17, 0.0  ;;  %v201_v14 = vld [vmem:[%s2206_s0 + $0x5d0] sm:$0xff]  ;;  %v251_v22 = vld [vmem:[%s2206_s0 + $0x760] sm:$0xff]  ;;  %v202_v1 = vld [vmem:[%s2206_s0 + $0x5d8] sm:$0xff] }
  0x61   :  { %v665_v32 = vadd.f32 %v664_v24, %v663_v49  ;;  %v770_v50 = vsel %vm271_vm0, %v247_v61, 0.0  ;;  %v397_v11 = vadd.f32 %v1497_v47, %v395_v40  ;;  %v666_v41 = vsel %vm271_vm0, %v200_v39, 0.0  ;;  %v226_v47 = vld [vmem:[%s2206_s0 + $0x698] sm:$0xff]  ;;  %v228_v6 = vld [vmem:[%s2206_s0 + $0x6a8] sm:$0xff] }
  0x62   :  { %v716_v58 = vadd.f32 %v715_v29, %v714_v33  ;;  %v769_v27 = vadd.f32 %v768_v30, %v767_v36  ;;  %v598_v23 = vadd.f32 %v597_v52, %v596_v13  ;;  %v599_v34 = vsel %vm271_vm0, %v169_v20, 0.0  ;;  %v171_v30 = vld [vmem:[%s2206_s0 + $0x4e0] sm:$0xff] }
  0x63   :  { %v719_v59 = vsel %vm271_vm0, %v224_v43, 0.0  ;;  %v772_v7 = vsel %vm271_vm0, %v248_v31, 0.0  ;;  %v464_v0 = vadd.f32 %v1633_v44, %v462_v51  ;;  %v531_v28 = vadd.f32 %v1764_v25, %v529_v18  ;;  %v824_v51 = vld [vmem:[%s2207_s1] sm:$0xf] }
  0x64   :  { %v718_v12 = vadd.f32 %v717_v2, %v716_v58  ;;  %v771_v5 = vadd.f32 %v770_v50, %v769_v27  ;;  %v330_v9 = vadd.f32 %v1356_v21, %v328_v57  ;;  %v667_v45 = vadd.f32 %v666_v41, %v665_v32 }
  0x65   :  { %v721_v4 = vsel %vm271_vm0, %v225_v19, 0.0  ;;  %v774_v40 = vsel %vm271_vm0, %v249_v35, 0.0  ;;  %v399_v44 = vadd.f32 %v1500_v48, %v397_v11  ;;  %v668_v25 = vsel %vm271_vm0, %v201_v14, 0.0  ;;  %v252_v48 = vld [vmem:[%s2206_s0 + $0x768] sm:$0xff]  ;;  %v203_v19 = vld [vmem:[%s2206_s0 + $0x5e0] sm:$0xff]  ;;  %v230_v35 = vld [vmem:[%s2206_s0 + $0x6b8] sm:$0xff] }
  0x66   :  { %v720_v16 = vadd.f32 %v719_v59, %v718_v12  ;;  %v773_v17 = vadd.f32 %v772_v7, %v771_v5  ;;  %v600_v21 = vadd.f32 %v599_v34, %v598_v23  ;;  %v601_v61 = vsel %vm271_vm0, %v170_v62, 0.0  ;;  %v254_v11 = vld [vmem:[%s2206_s0 + $0x778] sm:$0xff]  ;;  %v172_v23 = vld [vmem:[%s2206_s0 + $0x4e8] sm:$0xff] }
  0x67   :  { %v723_v52 = vsel %vm271_vm0, %v226_v47, 0.0  ;;  %v776_v24 = vsel %vm271_vm0, %v250_v63, 0.0  ;;  %v466_v39 = vadd.f32 %v1646_v42, %v464_v0  ;;  %v533_v13 = vadd.f32 %v1788_v26, %v531_v28  ;;  %v229_v42 = vld [vmem:[%s2206_s0 + $0x6b0] sm:$0xff]  ;;  %v255_v47 = vld [vmem:[%s2206_s0 + $0x780] sm:$0xff] }
  0x68   :  { %v722_v49 = vadd.f32 %v721_v4, %v720_v16  ;;  %v775_v29 = vadd.f32 %v774_v40, %v773_v17  ;;  %v669_v20 = vadd.f32 %v668_v25, %v667_v45  ;;  %v725_v43 = vsel %vm271_vm0, %v227_v8, 0.0  ;;  %v253_v26 = vld [vmem:[%s2206_s0 + $0x770] sm:$0xff]  ;;  %v204_v45 = vld [vmem:[%s2206_s0 + $0x5e8] sm:$0xff] }
  0x69   :  { %v778_v31 = vsel %vm271_vm0, %v251_v22, 0.0  ;;  %v602_v36 = vadd.f32 %v601_v61, %v600_v21  ;;  %v670_v57 = vsel %vm271_vm0, %v202_v1, 0.0  ;;  %v727_v32 = vsel %vm271_vm0, %v228_v6, 0.0  ;;  %v232_v4 = vld [vmem:[%s2206_s0 + $0x6c8] sm:$0xff]  ;;  %v173_v25 = vld [vmem:[%s2206_s0 + $0x4f0] sm:$0xff] }
  0x6a   :  { %v724_v18 = vadd.f32 %v723_v52, %v722_v49  ;;  %v777_v33 = vadd.f32 %v776_v24, %v775_v29  ;;  %v780_v2 = vsel %vm271_vm0, %v252_v48, 0.0  ;;  %v980_v50 = vmov 0.0   ;;  %v257_v52 = vld [vmem:[%s2206_s0 + $0x790] sm:$0xff]  ;;  %v234_v29 = vld [vmem:[%s2206_s0 + $0x6d8] sm:$0xff] }
  0x6b   :  { %950 = vmatprep.subr.mxu0 %v980_v50  ;;  %952 = vmatprep.mubr.msk.f32.mxu0 %vm981_vm2, %v980_v50  ;;  %v535_v41 = vadd.f32 %v1799_v15, %v533_v13  ;;  %v603_v58 = vsel %vm271_vm0, %v171_v30, 0.0  ;;  %v332_v34 = vadd.f32 %v1378_v37, %v330_v9  ;;  %v468_v59 = vadd.f32 %v1652_v55, %v466_v39  ;;  %v231_v15 = vld [vmem:[%s2206_s0 + $0x6c0] sm:$0xff]  ;;  %v205_v49 = vld [vmem:[%s2206_s0 + $0x5f0] sm:$0xff] }
  0x6c   :  { %v726_v27 = vadd.f32 %v725_v43, %v724_v18  ;;  %v779_v14 = vadd.f32 %v778_v31, %v777_v33  ;;  %951 = vmatpush3.msk.msra.mxu0 %vm856_vm1, %v824_v51  ;;  %v729_v7 = vsel %vm271_vm0, %v229_v42, 0.0  ;;  %v782_v62 = vsel %vm271_vm0, %v253_v26, 0.0  ;;  %v174_v51 = vld [vmem:[%s2206_s0 + $0x4f8] sm:$0xff] }
  0x6d   :  { %v401_v63 = vadd.f32 %v1509_v56, %v399_v44  ;;  %v671_v0 = vadd.f32 %v670_v57, %v669_v20  ;;  %v604_v37 = vadd.f32 %v603_v58, %v602_v36  ;;  %v672_v55 = vsel %vm271_vm0, %v203_v19, 0.0  ;;  %v256_v56 = vld [vmem:[%s2206_s0 + $0x788] sm:$0xff]  ;;  %v235_v36 = vld [vmem:[%s2206_s0 + $0x6e0] sm:$0xff] }
  0x6e   :  { %v728_v28 = vadd.f32 %v727_v32, %v726_v27  ;;  %v781_v12 = vadd.f32 %v780_v2, %v779_v14  ;;  %v731_v5 = vsel %vm271_vm0, %v230_v35, 0.0  ;;  %v784_v9 = vsel %vm271_vm0, %v254_v11, 0.0  ;;  %v236_v58 = vld [vmem:[%s2206_s0 + $0x6e8] sm:$0xff] }
  0x6f   :  { %v537_v40 = vadd.f32 %v1824_v54, %v535_v41  ;;  %v605_v8 = vsel %vm271_vm0, %v172_v23, 0.0  ;;  %v334_v16 = vadd.f32 %v1381_v38, %v332_v34  ;;  %v470_v17 = vadd.f32 %v1667_v53, %v468_v59  ;;  %v233_v54 = vld [vmem:[%s2206_s0 + $0x6d0] sm:$0xff]  ;;  %v206_v41 = vld [vmem:[%s2206_s0 + $0x5f8] sm:$0xff]  ;;  %v260_v27 = vld [vmem:[%s2206_s0 + $0x7a8] sm:$0xff] }
  0x70   :  { %v730_v22 = vadd.f32 %v729_v7, %v728_v28  ;;  %v783_v44 = vadd.f32 %v782_v62, %v781_v12  ;;  %v733_v21 = vsel %vm271_vm0, %v231_v15, 0.0  ;;  %v786_v61 = vsel %vm271_vm0, %v255_v47, 0.0 }
  0x71   :  { %v403_v24 = vadd.f32 %v1512_v46, %v401_v63  ;;  %v673_v1 = vadd.f32 %v672_v55, %v671_v0  ;;  %v606_v38 = vadd.f32 %v605_v8, %v604_v37  ;;  %v674_v53 = vsel %vm271_vm0, %v204_v45, 0.0  ;;  %v258_v46 = vld [vmem:[%s2206_s0 + $0x798] sm:$0xff]  ;;  %v237_v63 = vld [vmem:[%s2206_s0 + $0x6f0] sm:$0xff] }
  0x72   :  { %v732_v6 = vadd.f32 %v731_v5, %v730_v22  ;;  %v785_v48 = vadd.f32 %v784_v9, %v783_v44  ;;  %v735_v39 = vsel %vm271_vm0, %v232_v4, 0.0  ;;  %v788_v13 = vsel %vm271_vm0, %v256_v56, 0.0  ;;  %v261_v0 = vld [vmem:[%s2206_s0 + $0x7b0] sm:$0xff]  ;;  %v238_v4 = vld [vmem:[%s2206_s0 + $0x6f8] sm:$0xff] }
  0x73   :  { %v539_v30 = vadd.f32 %v1835_v60, %v537_v40  ;;  %v607_v20 = vsel %vm271_vm0, %v173_v25, 0.0  ;;  %v335_v42 = vrot.slane %v334_v16, 4  ;;  %v472_v26 = vadd.f32 %v1678_v10, %v470_v17  ;;  %v259_v60 = vld [vmem:[%s2206_s0 + $0x7a0] sm:$0xff]  ;;  %v262_v56 = vld [vmem:[%s2206_s0 + $0x7b8] sm:$0xff] }
  0x74   :  { %v734_v43 = vadd.f32 %v733_v21, %v732_v6  ;;  %v787_v31 = vadd.f32 %v786_v61, %v785_v48  ;;  %v737_v18 = vsel %vm271_vm0, %v233_v54, 0.0  ;;  %v790_v33 = vsel %vm271_vm0, %v257_v52, 0.0  ;;  %v263_v21 = vld [vmem:[%s2206_s0 + $0x7c0] sm:$0xff] }
  0x75   :  { %v404_v57 = vrot.slane %v403_v24, 4  ;;  %v675_v32 = vadd.f32 %v674_v53, %v673_v1  ;;  %v608_v19 = vadd.f32 %v607_v20, %v606_v38  ;;  %v676_v35 = vsel %vm271_vm0, %v205_v49, 0.0  ;;  %v264_v38 = vld [vmem:[%s2206_s0 + $0x7c8] sm:$0xff] }
  0x76   :  { %v736_v2 = vadd.f32 %v735_v39, %v734_v43  ;;  %v789_v50 = vadd.f32 %v788_v13, %v787_v31  ;;  %v739_v10 = vsel %vm271_vm0, %v234_v29, 0.0  ;;  %v792_v11 = vsel %vm271_vm0, %v258_v46, 0.0 }
  0x77   :  { %v541_v14 = vadd.f32 %v1862_v3, %v539_v30  ;;  %v609_v23 = vsel %vm271_vm0, %v174_v51, 0.0  ;;  %v336_v7 = vadd.f32 %v335_v42, %v334_v16  ;;  %v473_v62 = vrot.slane %v472_v26, 4  ;;  %v265_v30 = vld [vmem:[%s2206_s0 + $0x7d0] sm:$0xff] }
  0x78   :  { %v738_v34 = vadd.f32 %v737_v18, %v736_v2  ;;  %v791_v59 = vadd.f32 %v790_v33, %v789_v50  ;;  %v741_v15 = vsel %vm271_vm0, %v235_v36, 0.0  ;;  %v794_v47 = vsel %vm271_vm0, %v259_v60, 0.0  ;;  %v266_v18 = vld [vmem:[%s2206_s0 + $0x7d8] sm:$0xff]  ;;  %v267_v2 = vld [vmem:[%s2206_s0 + $0x7e0] sm:$0xff] }
  0x79   :  { %v405_v28 = vadd.f32 %v404_v57, %v403_v24  ;;  %v677_v3 = vadd.f32 %v676_v35, %v675_v32  ;;  %v610_v55 = vadd.f32 %v609_v23, %v608_v19  ;;  %v678_v5 = vsel %vm271_vm0, %v206_v41, 0.0 }
  0x7a   :  { %v740_v12 = vadd.f32 %v739_v10, %v738_v34  ;;  %v793_v37 = vadd.f32 %v792_v11, %v791_v59  ;;  %v743_v9 = vsel %vm271_vm0, %v236_v58, 0.0  ;;  %v796_v45 = vsel %vm271_vm0, %v260_v27, 0.0  ;;  %v268_v58 = vld [vmem:[%s2206_s0 + $0x7e8] sm:$0xff] }
  0x7b   :  { %v542_v40 = vrot.slane %v541_v14, 4  ;;  %v337_v44 = vrot.slane %v336_v7, 2  ;;  %v474_v25 = vadd.f32 %v473_v62, %v472_v26  ;;  %v745_v16 = vsel %vm271_vm0, %v237_v63, 0.0 }
  0x7c   :  { %v742_v8 = vadd.f32 %v741_v15, %v740_v12  ;;  %v795_v22 = vadd.f32 %v794_v47, %v793_v37  ;;  %v798_v17 = vsel %vm271_vm0, %v261_v0, 0.0  ;;  %v406_v61 = vrot.slane %v405_v28, 2 }
  0x7d   :  { %v679_v54 = vadd.f32 %v678_v5, %v677_v3  ;;  %v611_v1 = vrot.slane %v610_v55, 4  ;;  %v747_v6 = vsel %vm271_vm0, %v238_v4, 0.0  ;;  %v800_v48 = vsel %vm271_vm0, %v262_v56, 0.0  ;;  %v270_v3 = vld [vmem:[%s2206_s0 + $0x7f8] sm:$0xff] }
  0x7e   :  { %v744_v52 = vadd.f32 %v743_v9, %v742_v8  ;;  %v797_v24 = vadd.f32 %v796_v45, %v795_v22  ;;  %v543_v53 = vadd.f32 %v542_v40, %v541_v14  ;;  %v338_v49 = vadd.f32 %v337_v44, %v336_v7  ;;  %v269_v7 = vld [vmem:[%s2206_s0 + $0x7f0] sm:$0xff] }
  0x7f   :  { %v475_v29 = vrot.slane %v474_v25, 2  ;;  %v802_v46 = vsel %vm271_vm0, %v263_v21, 0.0  ;;  %v407_v20 = vadd.f32 %v406_v61, %v405_v28  ;;  %v680_v43 = vrot.slane %v679_v54, 4 }
  0x80   :  { %v746_v39 = vadd.f32 %v745_v16, %v744_v52  ;;  %v799_v13 = vadd.f32 %v798_v17, %v797_v24  ;;  %v612_v42 = vadd.f32 %v611_v1, %v610_v55  ;;  %v804_v26 = vsel %vm271_vm0, %v264_v38, 0.0 }
  0x81   :  { %v544_v33 = vrot.slane %v543_v53, 2  ;;  %v476_v60 = vadd.f32 %v475_v29, %v474_v25  ;;  %v806_v32 = vsel %vm271_vm0, %v265_v30, 0.0  ;;  %v339_v50 = vrot.slane %v338_v49, 1 }
  0x82   :  { %v748_v31 = vadd.f32 %v747_v6, %v746_v39  ;;  %v801_v51 = vadd.f32 %v800_v48, %v799_v13  ;;  %v408_v19 = vrot.slane %v407_v20, 1  ;;  %v681_v35 = vadd.f32 %v680_v43, %v679_v54 }
  0x83   :  { %v613_v11 = vrot.slane %v612_v42, 2  ;;  %v808_v41 = vsel %vm271_vm0, %v266_v18, 0.0  ;;  %v545_v27 = vadd.f32 %v544_v33, %v543_v53  ;;  %v477_v23 = vrot.slane %v476_v60, 1 }
  0x84   :  { %v803_v36 = vadd.f32 %v802_v46, %v801_v51  ;;  %v749_v57 = vrot.slane %v748_v31, 4  ;;  %v810_v59 = vsel %vm271_vm0, %v267_v2, 0.0  ;;  %v340_v62 = vadd.f32 %v339_v50, %v338_v49 }
  0x85   :  { %v409_v15 = vadd.f32 %v408_v19, %v407_v20  ;;  %v682_v47 = vrot.slane %v681_v35, 2  ;;  %v614_v0 = vadd.f32 %v613_v11, %v612_v42  ;;  %v812_v28 = vsel %vm271_vm0, %v268_v58, 0.0  ;;  %v945_v20 = vld [vmem:[%s2208_s2] ss:$0 sm:$0xff] }
  0x86   :  { %v805_v10 = vadd.f32 %v804_v26, %v803_v36  ;;  %v750_v34 = vadd.f32 %v749_v57, %v748_v31  ;;  %v546_v12 = vrot.slane %v545_v27, 1  ;;  %v478_v55 = vadd.f32 %v477_v23, %v476_v60 }
  0x87   :  { %v814_v9 = vsel %vm271_vm0, %v269_v7, 0.0  ;;  %v683_v45 = vadd.f32 %v682_v47, %v681_v35  ;;  %v841_v56 = vsel %vm840_vm3, %v409_v15, %v340_v62  ;;  %v615_v40 = vrot.slane %v614_v0, 1 }
  0x88   :  { %v807_v14 = vadd.f32 %v806_v32, %v805_v10  ;;  %v751_v5 = vrot.slane %v750_v34, 2  ;;  %v816_v8 = vsel %vm271_vm0, %v270_v3, 0.0  ;;  %v547_v22 = vadd.f32 %v546_v12, %v545_v27 }
  0x89   :  { %v843_v16 = vsel %vm842_vm4, %v478_v55, %v841_v56  ;;  %v684_v17 = vrot.slane %v683_v45, 1  ;;  %v616_v61 = vadd.f32 %v615_v40, %v614_v0  ;;  %vm848_vm7 = vcmask 1045509  }
  0x8a   :  { %v809_v63 = vadd.f32 %v808_v41, %v807_v14  ;;  %v752_v25 = vadd.f32 %v751_v5, %v750_v34  ;;  %v845_v52 = vsel %vm844_vm5, %v547_v22, %v843_v16  ;;  %vm850_vm8 = vcmask 1046534  }
  0x8b   :  { %v685_v1 = vadd.f32 %v684_v17, %v683_v45  ;;  %v847_v48 = vsel %vm846_vm6, %v616_v61, %v845_v52  ;;  %vm852_vm9 = vcmask 1047559  }
  0x8c   :  { %v811_v37 = vadd.f32 %v810_v59, %v809_v63  ;;  %v753_v24 = vrot.slane %v752_v25, 1 }
  0x8d   :  { %v849_v13 = vsel %vm848_vm7, %v685_v1, %v847_v48 }
  0x8e   :  { %v813_v4 = vadd.f32 %v812_v28, %v811_v37  ;;  %v754_v53 = vadd.f32 %v753_v24, %v752_v25 }
  0x90   :  { %v815_v44 = vadd.f32 %v814_v9, %v813_v4  ;;  %v851_v29 = vsel %vm850_vm8, %v754_v53, %v849_v13 }
  0x92   :  { %v817_v21 = vadd.f32 %v816_v8, %v815_v44 }
  0x94   :  { %v818_v54 = vrot.slane %v817_v21, 4 }
  0x96   :  { %v819_v6 = vadd.f32 %v818_v54, %v817_v21 }
  0x98   :  { %v820_v38 = vrot.slane %v819_v6, 2 }
  0x9a   :  { %v821_v39 = vadd.f32 %v820_v38, %v819_v6 }
  0x9c   :  { %v822_v49 = vrot.slane %v821_v39, 1 }
  0x9e   :  { %v823_v46 = vadd.f32 %v822_v49, %v821_v39 }
  0xa0   :  { %v853_v30 = vsel %vm852_vm9, %v823_v46, %v851_v29 }
  0xa1   :  { %953 = vmatmul.mubr.msk.f32.vlgmr.msra.gmra.mxu0 %vm271_vm0, %v853_v30 }
 0x161   :  { %v926_v43 = vpop.f32.mrf.mxu0 }
 0x162   :  { %v927_v31 = vadd.f32 %v945_v20, %v926_v43 }
 0x163   :  { %v954_v51 = vpop.f32.mrf.mxu0 }
 0x164   :  { %930 = vst [vmem:[#allocation2] sm:$0xff] %v927_v31 }
 0x165   :  { %969 = shalt.err (!%p966_p4)
}
 0x166   :  { %940 = dma.vmem_to_hbm [thread:$0]  %s938_s12, 128, %s2209_s3, [#allocation3]  }
 0x167   :  { %978 = dma.done.wait [#allocation3], 128  }
 0x168   :  { %979 = vsyncadd [#allocation3], 4294967168 }
 0x169   :  { %944 = vsyncpa [#allocation3], 1 }

</bundles_post_ra>
